<compile_context>
chip_gen: v7x
topology: tpu7x:2x2x1
jax: 0.10.0
libtpu: 0.0.40
codegen_flags: <defaults>
</compile_context>

<pallas_src>
import jax
import jax.numpy as jnp
from jax.experimental import pallas as pl
from jax.experimental.pallas import tpu as pltpu

_LANES = 128
_MAX_COLS = 16384                       # keep the lane dim a sane vreg multiple
_TARGET_BLOCK_BYTES = 4 * 1024 * 1024   # ~4 MiB blocks: >85% of HBM roofline


def _identity_kernel(x_ref, o_ref):
    # Pure lane-dense VMEM copy of the current tile.
    o_ref[...] = x_ref[...]


def _copy_2d(x2d):
    """Tiled identity copy of a 2-D view; output aliases the input buffer."""
    rows, cols = x2d.shape
    itemsize = jnp.dtype(x2d.dtype).itemsize
    # dtype-correct sublane packing: 8 (f32/i32), 16 (bf16/f16), 32 (int8/fp8).
    sublanes = max(8, 32 // max(1, itemsize))

    if rows > 1:
        # Lane-dense case: cols is a multiple of 128; tile along the row axis.
        tile_rows = max(1, _TARGET_BLOCK_BYTES // max(1, cols * itemsize))
        if tile_rows >= rows or rows <= sublanes:
            tile_rows = rows            # single block over rows (always legal)
        else:
            tile_rows = max(sublanes, (tile_rows // sublanes) * sublanes)
        grid = (pl.cdiv(rows, tile_rows),)
        block = (tile_rows, cols)
        index_map = lambda i: (i, 0)
    else:
        # Single-row view (total size not a multiple of 128): tile along lanes
        # in multiples of 128; Pallas masks the ragged final block.
        tile_cols = max(_LANES, _TARGET_BLOCK_BYTES // max(1, itemsize))
        if tile_cols >= cols:
            tile_cols = cols            # block last dim == full dim -> legal
        else:
            tile_cols = (tile_cols // _LANES) * _LANES
        grid = (pl.cdiv(cols, tile_cols),)
        block = (1, tile_cols)
        index_map = lambda i: (0, i)

    return pl.pallas_call(
        _identity_kernel,
        out_shape=jax.ShapeDtypeStruct((rows, cols), x2d.dtype),
        grid_spec=pltpu.PrefetchScalarGridSpec(
            num_scalar_prefetch=0,
            grid=grid,
            in_specs=[pl.BlockSpec(block, index_map)],
            out_specs=pl.BlockSpec(block, index_map),
        ),
        compiler_params=pltpu.CompilerParams(
            dimension_semantics=("parallel",),
        ),
        # Output aliases the (donated) input buffer: no extra HBM allocation.
        input_output_aliases={0: 0},
    )(x2d)


def _best_2d_view(n, last_dim):
    """Pick a lane-friendly (rows, cols) factorization of n elements."""
    if n % _LANES == 0:
        # Widen cols (multiple of 128 lanes) while it still divides the total,
        # so every store is an unmasked full-lane vst.
        cols = _LANES
        while cols * 2 <= _MAX_COLS and n % (cols * 2) == 0:
            cols *= 2
        return n // cols, cols
    # Not lane-divisible: single row, tiled along lanes (masked tail only).
    return 1, n


def _identity_impl(x):
    orig_shape = x.shape
    n = x.size
    if n == 0:
        return x

    if x.ndim == 0:
        rows, cols = 1, 1
    else:
        rows, cols = _best_2d_view(n, orig_shape[-1])

    y2d = _copy_2d(x.reshape(rows, cols))  # reshapes are free bitcasts under jit
    return y2d.reshape(orig_shape)


# Donating the argument lets XLA alias the kernel output to the input HBM
# buffer, so the identity costs exactly one read + one in-place write with
# zero extra allocation.  NOTE: callers must not reuse `x` after this call.
identity = jax.jit(_identity_impl, donate_argnums=0)


if __name__ == "__main__":
    key = jax.random.PRNGKey(0)
    x = jax.random.normal(key, (2, 4, 16, 16), dtype=jnp.float32)  # NCHW
    x_check = jnp.copy(x)  # reference copy; `x` itself is donated below
    jax.block_until_ready((x, x_check))

    y = identity(x)
    jax.block_until_ready(y)

    assert y.shape == x_check.shape and y.dtype == x_check.dtype
    assert bool(jnp.all(y == x_check))
    print("KERNEL_OK")
</pallas_src>

<mosaic_0001>
module attributes {stable_mosaic.version = 11 : i64} {
  func.func @_identity_kernel(%arg0: i32, %arg1: memref<1x2048xf32, #tpu.memory_space<vmem>>, %arg2: memref<1x2048xf32, #tpu.memory_space<vmem>>) attributes {dimension_semantics = [#tpu.dimension_semantics<parallel>], iteration_bounds = array<i64: 1>, scalar_prefetch = 0 : i64, scratch_operands = 0 : i64, tpu.core_type = #tpu.core_type<tc>, window_params = [{transform_indices = @transform_0, window_bounds = array<i64: 1, 2048>}, {transform_indices = @transform_1, window_bounds = array<i64: 1, 2048>}]} {
    %c0 = arith.constant 0 : index
    %c0_0 = arith.constant 0 : index
    %0 = vector.load %arg1[%c0, %c0_0] : memref<1x2048xf32, #tpu.memory_space<vmem>>, vector<1x2048xf32>
    %c0_1 = arith.constant 0 : index
    %c0_2 = arith.constant 0 : index
    %1 = vector.load %arg2[%c0_1, %c0_2] : memref<1x2048xf32, #tpu.memory_space<vmem>>, vector<1x2048xf32>
    tpu.vector_store %arg2[%c0_1, %c0_2], %0 {strides = array<i32>} : memref<1x2048xf32, #tpu.memory_space<vmem>>, vector<1x2048xf32>,
    return
  }
  func.func @transform_0(%arg0: i32) -> (i32, i32) {
    %c0_i32 = arith.constant 0 : i32
    %c0_i32_0 = arith.constant 0 : i32
    return %c0_i32, %arg0 : i32, i32
  }
  func.func @transform_1(%arg0: i32) -> (i32, i32) {
    %c0_i32 = arith.constant 0 : i32
    %c0_i32_0 = arith.constant 0 : i32
    return %c0_i32, %arg0 : i32, i32
  }
}

</mosaic_0001>

<bundles_post_ra>
// kernel: _identity_impl.1
= control target key start
LH: loop header
LB: loop body
LE: loop exit
PB: predicated region body
PF: predicated region fallthrough
CT: control target
= control target key end

     0   :  { %s38_s0 = inlined_call_operand.vmem [shape: f32[1,2048], index: 0, kind: input, shape index: {}, may-alias: {0,1}]   ;;  %s39_s1 = inlined_call_operand.vmem [shape: f32[1,2048], index: 1, kind: output, shape index: {}, may-alias: {0,1}]  }
   0x1   :  { %v8_v0 = vld [vmem:[%s38_s0] sm:$0xff]  ;;  %v9_v1 = vld [vmem:[%s38_s0 + $0x8] sm:$0xff] }
   0x2   :  { %10 = vst [vmem:[%s39_s1] sm:$0xff] %v8_v0  ;;  %11 = vst [vmem:[%s39_s1 + $0x8] sm:$0xff] %v9_v1 }

</bundles_post_ra>
